<compile_context>
chip_gen: v6e
topology: v6e:2x2x1
jax: 0.10.0
libtpu: 0.0.40
codegen_flags: <defaults>
</compile_context>

<pallas_src>
import functools
import math

import numpy as np
import jax
import jax.numpy as jnp
from jax.experimental import pallas as pl
from jax.experimental.pallas import tpu as pltpu


# ------------------------------- fused kernel -------------------------------

def _decoder_fused_kernel(x_ref, w2t_ref, b2_ref, w1t_ref, b1_ref,
                          m1_ref, mb1_ref, m2_ref, mb2_ref, o_ref):
    f32 = jnp.float32
    # fc2 -> relu
    h = jnp.dot(x_ref[...], w2t_ref[...], preferred_element_type=f32) + b2_ref[...]
    h = jnp.maximum(h, 0.0)
    # fc1 -> relu
    h = jnp.dot(h, w1t_ref[...], preferred_element_type=f32) + b1_ref[...]
    h = jnp.maximum(h, 0.0)
    # view -> bicubic x2 -> conv2 3x3 'same' (folded into M1) -> relu
    h = jnp.dot(h, m1_ref[...], preferred_element_type=f32) + mb1_ref[...]
    h = jnp.maximum(h, 0.0)
    # bicubic x2 -> conv1 3x3 'same' (folded into M2) -> sigmoid
    h = jnp.dot(h, m2_ref[...], preferred_element_type=f32) + mb2_ref[...]
    o_ref[...] = jax.nn.sigmoid(h).astype(o_ref.dtype)


def decoder_forward(x, prepped, *, input_dim, in_channels, block_b=256):
    """x: (B, latent_dim) -> (B, in_channels, input_dim, input_dim)."""
    w2t, b2, w1t, b1, m1, mb1, m2, mb2 = prepped
    B, L = x.shape
    n_out = m2.shape[1]                      # in_channels * input_dim**2 (lane-dense)
    bm = B if B <= block_b else block_b      # batch tile; grid of 1 at small B
    weights = (w2t, b2, w1t, b1, m1, mb1, m2, mb2)

    def _full(a):                            # whole-array block, resident every step
        return pl.BlockSpec(a.shape, lambda i: (0, 0))

    out_flat = pl.pallas_call(
        _decoder_fused_kernel,
        out_shape=jax.ShapeDtypeStruct((B, n_out), x.dtype),
        grid=(pl.cdiv(B, bm),),
        in_specs=[pl.BlockSpec((bm, L), lambda i: (i, 0))]
                 + [_full(a) for a in weights],
        out_specs=pl.BlockSpec((bm, n_out), lambda i: (i, 0)),
        compiler_params=pltpu.CompilerParams(
            dimension_semantics=("parallel",),
            vmem_limit_bytes=64 << 20),
    )(x, *weights)
    return out_flat.reshape(B, in_channels, input_dim, input_dim)


# ---------------- bicubic / conv operator folding (host, once) ---------------

def _cubic_weight(x, a=-0.75):
    x = abs(x)
    if x <= 1.0:
        return ((a + 2.0) * x - (a + 3.0)) * x * x + 1.0
    if x < 2.0:
        return (((x - 5.0) * x + 8.0) * x - 4.0) * a
    return 0.0


def _bicubic_x2_matrix(n):
    """(2n, n) operator == torch.nn.Upsample(scale_factor=2, mode='bicubic',
    align_corners=False) along one axis (half-pixel centres, clamped borders)."""
    m = 2 * n
    U = np.zeros((m, n), dtype=np.float64)
    for i in range(m):
        src = (i + 0.5) / 2.0 - 0.5
        f = int(math.floor(src))
        t = src - f
        for k in range(-1, 3):
            idx = min(max(f + k, 0), n - 1)
            U[i, idx] += _cubic_weight(t - k)
    return U


def _shifted_upsample_taps(n):
    """(3, 2n, n): tap a in {0,1,2} gives U[y+a-1, i], zeroed where the 3x3
    'same' conv would read the zero padding (y+a-1 outside [0, 2n))."""
    U = _bicubic_x2_matrix(n)
    Up = np.zeros((2 * n + 2, n), dtype=np.float64)
    Up[1:-1] = U
    return np.stack([Up[a:a + 2 * n] for a in range(3)], axis=0)


def _fold_upsample_conv(conv_w, conv_b, n_in):
    """Compose bicubic-x2 upsample + zero-'same' 3x3 conv into a dense operator.

    conv_w: (Cout, Cin, 3, 3), conv_b: (Cout,); input spatial n_in x n_in.
    Returns M: (Cin*n_in^2, Cout*(2*n_in)^2) and bias row (1, Cout*(2*n_in)^2)
    such that  flat_out = flat_in @ M + bias  ==
    conv2d(upsample_bicubic_x2(x), conv_w, conv_b, padding='same'), flattened
    channel-major (c, y, x) on both sides.
    """
    w = np.asarray(conv_w, dtype=np.float64)
    cout, cin = w.shape[0], w.shape[1]
    ush = _shifted_upsample_taps(n_in)                       # (3, 2n, n)
    big = np.einsum('ocab,ayi,bxj->cijoyx', w, ush, ush)
    n, two_n = n_in, 2 * n_in
    M = big.reshape(cin * n * n, cout * two_n * two_n).astype(np.float32)
    bias = np.repeat(np.asarray(conv_b, dtype=np.float32), two_n * two_n)
    return jnp.asarray(M), jnp.asarray(bias.reshape(1, -1))


def prepare_decoder_params(params, *, input_dim, in_channels, out_channels,
                           latent_dim):
    """One-time (outside jit) parameter preparation for the fused kernel."""
    del in_channels, out_channels, latent_dim   # implied by the weight shapes
    s = input_dim // 4
    w2t = jnp.asarray(params["fc2_w"], jnp.float32).T    # pre-transposed fc weights
    b2 = jnp.asarray(params["fc2_b"], jnp.float32).reshape(1, -1)
    w1t = jnp.asarray(params["fc1_w"], jnp.float32).T
    b1 = jnp.asarray(params["fc1_b"], jnp.float32).reshape(1, -1)
    m1, mb1 = _fold_upsample_conv(params["conv2_w"], params["conv2_b"], s)
    m2, mb2 = _fold_upsample_conv(params["conv1_w"], params["conv1_b"], 2 * s)
    return (w2t, b2, w1t, b1, m1, mb1, m2, mb2)


# ------------------------------- init & reference ----------------------------

def init_decoder_params(key, input_dim=16, in_channels=1, out_channels=4,
                        latent_dim=32):
    s = input_dim // 4
    c2 = out_channels * 2
    flatten_dim = s * s * c2
    ks = jax.random.split(key, 8)

    def u(k, shape, fan_in):
        bound = 1.0 / math.sqrt(fan_in)
        return jax.random.uniform(k, shape, jnp.float32, -bound, bound)

    params = {
        "fc2_w": u(ks[0], (flatten_dim // 4, latent_dim), latent_dim),
        "fc2_b": u(ks[1], (flatten_dim // 4,), latent_dim),
        "fc1_w": u(ks[2], (flatten_dim, flatten_dim // 4), flatten_dim // 4),
        "fc1_b": u(ks[3], (flatten_dim,), flatten_dim // 4),
        "conv2_w": u(ks[4], (out_channels, c2, 3, 3), c2 * 9),
        "conv2_b": u(ks[5], (out_channels,), c2 * 9),
        "conv1_w": u(ks[6], (in_channels, out_channels, 3, 3), out_channels * 9),
        "conv1_b": u(ks[7], (in_channels,), out_channels * 9),
    }
    meta = dict(input_dim=input_dim, in_channels=in_channels,
                out_channels=out_channels, latent_dim=latent_dim)
    return params, meta


def decoder_reference(x, params, *, input_dim, in_channels, out_channels,
                      latent_dim):
    """Stage-by-stage plain-JAX reference (PyTorch semantics) for validation."""
    del in_channels, latent_dim
    hp = jax.lax.Precision.HIGHEST
    s = input_dim // 4
    c2 = out_channels * 2
    h = jnp.maximum(jnp.dot(x, params["fc2_w"].T, precision=hp)
                    + params["fc2_b"], 0.0)
    h = jnp.maximum(jnp.dot(h, params["fc1_w"].T, precision=hp)
                    + params["fc1_b"], 0.0)
    h = h.reshape(-1, c2, s, s)
    U1 = jnp.asarray(_bicubic_x2_matrix(s), dtype=jnp.float32)
    h = jnp.einsum('Yh,bchw,Xw->bcYX', U1, h, U1, precision=hp)
    h = jax.lax.conv_general_dilated(h, params["conv2_w"], (1, 1), 'SAME',
                                     dimension_numbers=('NCHW', 'OIHW', 'NCHW'),
                                     precision=hp)
    h = jnp.maximum(h + params["conv2_b"].reshape(1, -1, 1, 1), 0.0)
    U2 = jnp.asarray(_bicubic_x2_matrix(2 * s), dtype=jnp.float32)
    h = jnp.einsum('Yh,bchw,Xw->bcYX', U2, h, U2, precision=hp)
    h = jax.lax.conv_general_dilated(h, params["conv1_w"], (1, 1), 'SAME',
                                     dimension_numbers=('NCHW', 'OIHW', 'NCHW'),
                                     precision=hp)
    return jax.nn.sigmoid(h + params["conv1_b"].reshape(1, -1, 1, 1))


# ------------------------------------ main -----------------------------------

if __name__ == "__main__":
    key = jax.random.PRNGKey(0)
    pkey, xkey = jax.random.split(key)

    # Small consistent configuration: spatial 4 -> 8 -> 16, channels 8 -> 4 -> 1.
    input_dim, in_channels, out_channels, latent_dim = 16, 1, 4, 32
    params, meta = init_decoder_params(pkey, input_dim, in_channels,
                                       out_channels, latent_dim)
    prepped = prepare_decoder_params(params, **meta)

    B = 2
    x = jax.random.normal(xkey, (B, latent_dim), jnp.float32)

    fwd = jax.jit(functools.partial(decoder_forward, input_dim=input_dim,
                                    in_channels=in_channels))
    out = jax.block_until_ready(fwd(x, prepped))

    assert out.shape == (B, in_channels, input_dim, input_dim), out.shape
    assert bool(jnp.all(jnp.isfinite(out)))
    assert bool(jnp.all((out >= 0.0) & (out <= 1.0)))      # sigmoid range

    # Validate the fused/folded kernel against the stage-by-stage reference.
    ref = jax.block_until_ready(decoder_reference(x, params, **meta))
    np.testing.assert_allclose(np.asarray(out), np.asarray(ref),
                               rtol=0.0, atol=2e-3)

    print("KERNEL_OK")
</pallas_src>

<mosaic_0001>
module attributes {stable_mosaic.version = 11 : i64} {
  func.func @_decoder_fused_kernel(%arg0: i32, %arg1: memref<2x32xf32, #tpu.memory_space<vmem>>, %arg2: memref<32x32xf32, #tpu.memory_space<vmem>>, %arg3: memref<1x32xf32, #tpu.memory_space<vmem>>, %arg4: memref<32x128xf32, #tpu.memory_space<vmem>>, %arg5: memref<1x128xf32, #tpu.memory_space<vmem>>, %arg6: memref<128x256xf32, #tpu.memory_space<vmem>>, %arg7: memref<1x256xf32, #tpu.memory_space<vmem>>, %arg8: memref<256x256xf32, #tpu.memory_space<vmem>>, %arg9: memref<1x256xf32, #tpu.memory_space<vmem>>, %arg10: memref<2x256xf32, #tpu.memory_space<vmem>>) attributes {dimension_semantics = [#tpu.dimension_semantics<parallel>], iteration_bounds = array<i64: 1>, scalar_prefetch = 0 : i64, scratch_operands = 0 : i64, tpu.core_type = #tpu.core_type<tc>, window_params = [{transform_indices = @transform_0, window_bounds = array<i64: 2, 32>}, {pipeline_mode = #tpu.pipeline_mode<synchronous>, transform_indices = @transform_1, window_bounds = array<i64: 32, 32>}, {pipeline_mode = #tpu.pipeline_mode<synchronous>, transform_indices = @transform_2, window_bounds = array<i64: 1, 32>}, {pipeline_mode = #tpu.pipeline_mode<synchronous>, transform_indices = @transform_3, window_bounds = array<i64: 32, 128>}, {pipeline_mode = #tpu.pipeline_mode<synchronous>, transform_indices = @transform_4, window_bounds = array<i64: 1, 128>}, {pipeline_mode = #tpu.pipeline_mode<synchronous>, transform_indices = @transform_5, window_bounds = array<i64: 128, 256>}, {pipeline_mode = #tpu.pipeline_mode<synchronous>, transform_indices = @transform_6, window_bounds = array<i64: 1, 256>}, {pipeline_mode = #tpu.pipeline_mode<synchronous>, transform_indices = @transform_7, window_bounds = array<i64: 256, 256>}, {pipeline_mode = #tpu.pipeline_mode<synchronous>, transform_indices = @transform_8, window_bounds = array<i64: 1, 256>}, {transform_indices = @transform_9, window_bounds = array<i64: 2, 256>}]} {
    %c0 = arith.constant 0 : index
    %c0_0 = arith.constant 0 : index
    %0 = vector.load %arg1[%c0, %c0_0] : memref<2x32xf32, #tpu.memory_space<vmem>>, vector<2x32xf32>
    %c0_1 = arith.constant 0 : index
    %c0_2 = arith.constant 0 : index
    %1 = vector.load %arg2[%c0_1, %c0_2] : memref<32x32xf32, #tpu.memory_space<vmem>>, vector<32x32xf32>
    %cst = arith.constant dense<0.000000e+00> : vector<2x32xf32>
    %2 = tpu.matmul %0, %1, %cst {dimension_numbers = #tpu.dot_dimension_numbers<[1], [0], [0], [1], [0, 0, 1, 1], [], []>} : vector<2x32xf32>, vector<32x32xf32>, vector<2x32xf32> -> vector<2x32xf32>
    %c0_3 = arith.constant 0 : index
    %c0_4 = arith.constant 0 : index
    %3 = vector.load %arg3[%c0_3, %c0_4] : memref<1x32xf32, #tpu.memory_space<vmem>>, vector<1x32xf32>
    %4 = vector.broadcast %3 : vector<1x32xf32> to vector<2x32xf32>
    %5 = arith.addf %2, %4 : vector<2x32xf32>
    %cst_5 = arith.constant 0.000000e+00 : f32
    %6 = vector.broadcast %cst_5 : f32 to vector<2x32xf32>
    %7 = arith.maximumf %5, %6 : vector<2x32xf32>
    %c0_6 = arith.constant 0 : index
    %c0_7 = arith.constant 0 : index
    %8 = vector.load %arg4[%c0_6, %c0_7] : memref<32x128xf32, #tpu.memory_space<vmem>>, vector<32x128xf32>
    %cst_8 = arith.constant dense<0.000000e+00> : vector<2x128xf32>
    %9 = tpu.matmul %7, %8, %cst_8 {dimension_numbers = #tpu.dot_dimension_numbers<[1], [0], [0], [1], [0, 0, 1, 1], [], []>} : vector<2x32xf32>, vector<32x128xf32>, vector<2x128xf32> -> vector<2x128xf32>
    %c0_9 = arith.constant 0 : index
    %c0_10 = arith.constant 0 : index
    %10 = vector.load %arg5[%c0_9, %c0_10] : memref<1x128xf32, #tpu.memory_space<vmem>>, vector<1x128xf32>
    %11 = vector.broadcast %10 : vector<1x128xf32> to vector<2x128xf32>
    %12 = arith.addf %9, %11 : vector<2x128xf32>
    %cst_11 = arith.constant 0.000000e+00 : f32
    %13 = vector.broadcast %cst_11 : f32 to vector<2x128xf32>
    %14 = arith.maximumf %12, %13 : vector<2x128xf32>
    %c0_12 = arith.constant 0 : index
    %c0_13 = arith.constant 0 : index
    %15 = vector.load %arg6[%c0_12, %c0_13] : memref<128x256xf32, #tpu.memory_space<vmem>>, vector<128x256xf32>
    %cst_14 = arith.constant dense<0.000000e+00> : vector<2x256xf32>
    %16 = tpu.matmul %14, %15, %cst_14 {dimension_numbers = #tpu.dot_dimension_numbers<[1], [0], [0], [1], [0, 0, 1, 1], [], []>} : vector<2x128xf32>, vector<128x256xf32>, vector<2x256xf32> -> vector<2x256xf32>
    %c0_15 = arith.constant 0 : index
    %c0_16 = arith.constant 0 : index
    %17 = vector.load %arg7[%c0_15, %c0_16] : memref<1x256xf32, #tpu.memory_space<vmem>>, vector<1x256xf32>
    %18 = vector.broadcast %17 : vector<1x256xf32> to vector<2x256xf32>
    %19 = arith.addf %16, %18 : vector<2x256xf32>
    %cst_17 = arith.constant 0.000000e+00 : f32
    %20 = vector.broadcast %cst_17 : f32 to vector<2x256xf32>
    %21 = arith.maximumf %19, %20 : vector<2x256xf32>
    %c0_18 = arith.constant 0 : index
    %c0_19 = arith.constant 0 : index
    %22 = vector.load %arg8[%c0_18, %c0_19] : memref<256x256xf32, #tpu.memory_space<vmem>>, vector<256x256xf32>
    %cst_20 = arith.constant dense<0.000000e+00> : vector<2x256xf32>
    %23 = tpu.matmul %21, %22, %cst_20 {dimension_numbers = #tpu.dot_dimension_numbers<[1], [0], [0], [1], [0, 0, 1, 1], [], []>} : vector<2x256xf32>, vector<256x256xf32>, vector<2x256xf32> -> vector<2x256xf32>
    %c0_21 = arith.constant 0 : index
    %c0_22 = arith.constant 0 : index
    %24 = vector.load %arg9[%c0_21, %c0_22] : memref<1x256xf32, #tpu.memory_space<vmem>>, vector<1x256xf32>
    %25 = vector.broadcast %24 : vector<1x256xf32> to vector<2x256xf32>
    %26 = arith.addf %23, %25 : vector<2x256xf32>
    %27 = arith.negf %26 : vector<2x256xf32>
    %28 = math.exp %27 : vector<2x256xf32>
    %cst_23 = arith.constant 1.000000e+00 : f32
    %29 = vector.broadcast %cst_23 : f32 to vector<2x256xf32>
    %30 = arith.addf %29, %28 : vector<2x256xf32>
    %31 = arith.divf %29, %30 : vector<2x256xf32>
    %c0_24 = arith.constant 0 : index
    %c0_25 = arith.constant 0 : index
    %32 = vector.load %arg10[%c0_24, %c0_25] : memref<2x256xf32, #tpu.memory_space<vmem>>, vector<2x256xf32>
    tpu.vector_store %arg10[%c0_24, %c0_25], %31 {strides = array<i32>} : memref<2x256xf32, #tpu.memory_space<vmem>>, vector<2x256xf32>,
    return
  }
  func.func @transform_0(%arg0: i32) -> (i32, i32) {
    %c0_i32 = arith.constant 0 : i32
    %c0_i32_0 = arith.constant 0 : i32
    return %arg0, %c0_i32 : i32, i32
  }
  func.func @transform_1(%arg0: i32) -> (i32, i32) {
    %c0_i32 = arith.constant 0 : i32
    %c0_i32_0 = arith.constant 0 : i32
    %c0_i32_1 = arith.constant 0 : i32
    return %c0_i32, %c0_i32_0 : i32, i32
  }
  func.func @transform_2(%arg0: i32) -> (i32, i32) {
    %c0_i32 = arith.constant 0 : i32
    %c0_i32_0 = arith.constant 0 : i32
    %c0_i32_1 = arith.constant 0 : i32
    return %c0_i32, %c0_i32_0 : i32, i32
  }
  func.func @transform_3(%arg0: i32) -> (i32, i32) {
    %c0_i32 = arith.constant 0 : i32
    %c0_i32_0 = arith.constant 0 : i32
    %c0_i32_1 = arith.constant 0 : i32
    return %c0_i32, %c0_i32_0 : i32, i32
  }
  func.func @transform_4(%arg0: i32) -> (i32, i32) {
    %c0_i32 = arith.constant 0 : i32
    %c0_i32_0 = arith.constant 0 : i32
    %c0_i32_1 = arith.constant 0 : i32
    return %c0_i32, %c0_i32_0 : i32, i32
  }
  func.func @transform_5(%arg0: i32) -> (i32, i32) {
    %c0_i32 = arith.constant 0 : i32
    %c0_i32_0 = arith.constant 0 : i32
    %c0_i32_1 = arith.constant 0 : i32
    return %c0_i32, %c0_i32_0 : i32, i32
  }
  func.func @transform_6(%arg0: i32) -> (i32, i32) {
    %c0_i32 = arith.constant 0 : i32
    %c0_i32_0 = arith.constant 0 : i32
    %c0_i32_1 = arith.constant 0 : i32
    return %c0_i32, %c0_i32_0 : i32, i32
  }
  func.func @transform_7(%arg0: i32) -> (i32, i32) {
    %c0_i32 = arith.constant 0 : i32
    %c0_i32_0 = arith.constant 0 : i32
    %c0_i32_1 = arith.constant 0 : i32
    return %c0_i32, %c0_i32_0 : i32, i32
  }
  func.func @transform_8(%arg0: i32) -> (i32, i32) {
    %c0_i32 = arith.constant 0 : i32
    %c0_i32_0 = arith.constant 0 : i32
    %c0_i32_1 = arith.constant 0 : i32
    return %c0_i32, %c0_i32_0 : i32, i32
  }
  func.func @transform_9(%arg0: i32) -> (i32, i32) {
    %c0_i32 = arith.constant 0 : i32
    %c0_i32_0 = arith.constant 0 : i32
    return %arg0, %c0_i32 : i32, i32
  }
}

</mosaic_0001>

<bundles_post_ra>
// kernel: decoder_forward.1
= control target key start
LH: loop header
LB: loop body
LE: loop exit
PB: predicated region body
PF: predicated region fallthrough
CT: control target
= control target key end

     0   :  { %14 = vsyncpa [#allocation3], 0  ;;  %s836_s0 = inlined_call_operand.hbm [shape: f32[2,32], index: 0, kind: input, shape index: {}]   ;;  %s837_s1 = inlined_call_operand.hbm [shape: f32[32,32], index: 1, kind: input, shape index: {}]   ;;  %s838_s2 = inlined_call_operand.vmem [shape: f32[1,32], index: 2, kind: input, shape index: {}]   ;;  %s839_s3 = inlined_call_operand.hbm [shape: f32[32,128], index: 3, kind: input, shape index: {}]   ;;  %s840_s4 = inlined_call_operand.vmem [shape: f32[1,128], index: 4, kind: input, shape index: {}]   ;;  %s841_s5 = inlined_call_operand.hbm [shape: f32[128,256], index: 5, kind: input, shape index: {}]   ;;  %s842_s6 = inlined_call_operand.vmem [shape: f32[1,256], index: 6, kind: input, shape index: {}]   ;;  %s843_s7 = inlined_call_operand.hbm [shape: f32[256,256], index: 7, kind: input, shape index: {}]   ;;  %s844_s8 = inlined_call_operand.vmem [shape: f32[1,256], index: 8, kind: input, shape index: {}]   ;;  %s845_s9 = inlined_call_operand.vmem [shape: f32[2,256], index: 9, kind: output, shape index: {}]  }
   0x1   :  { %15 = vsyncpa [#allocation5], 0 }
   0x2   :  { %16 = vsyncpa [#allocation8], 0  ;;  %s729_s30 = smov [#allocation4]  }
   0x3   :  { %s32_s10 = sshll.u32 %s729_s30, 4  ;;  %s33_s10 = int_to_ptr.vmem [resolvable:$true] %s32_s10 }
   0x4   :  { %s631_s11 = scalar_lea.vmem %s33_s10, 512  ;;  %p636_p1 = scmp.lt.s32.totalorder %s33_s10, %s33_s10 }
   0x5   :  { %p632_p0 = scmp.ne.s32.totalorder %s33_s10, %s631_s11  ;;  %p637_p2 = scmp.lt.s32.totalorder %s631_s11, %s631_s11 }
   0x7   :  { %p638_p3 = por %p637_p2, %p636_p1 }
   0x9   :  { %p639_p4 = pnand %p638_p3, %p632_p0 }
   0xb   :  { %642 = shalt.err (!%p639_p4)
}
   0xc   :  { %s730_s12 = smov 128   ;;  %s731_s13 = smov 8  }
   0xd   :  { %38 = dma.hbm_to_vmem [thread:$0]  %s837_s1, 512, %s33_s10, [#allocation5], %s730_s12, %s730_s12, %s731_s13  }
   0xe   :  { %s732_s16 = smov [#allocation7]  }
   0xf   :  { %s60_s17 = sshll.u32 %s732_s16, 4  ;;  %s61_s17 = int_to_ptr.vmem [resolvable:$true] %s60_s17 }
  0x10   :  { %s651_s18 = scalar_lea.vmem %s61_s17, 4096  ;;  %p656_p6 = scmp.lt.s32.totalorder %s61_s17, %s61_s17 }
  0x11   :  { %p652_p5 = scmp.ne.s32.totalorder %s61_s17, %s651_s18  ;;  %p657_p7 = scmp.lt.s32.totalorder %s651_s18, %s651_s18 }
  0x13   :  { %p658_p8 = por %p657_p7, %p656_p6 }
  0x15   :  { %p659_p9 = pnand %p658_p8, %p652_p5 }
  0x17   :  { %662 = shalt.err (!%p659_p9)
}
  0x18   :  { %s733_s19 = smov 256   ;;  %s734_s20 = smov 16  }
  0x19   :  { %66 = dma.hbm_to_vmem [thread:$0]  %s841_s5, 4096, %s61_s17, [#allocation8], %s733_s19, %s733_s19, %s734_s20  }
  0x1a   :  { %s735_s1 = smov [#allocation2]   ;;  %s736_s24 = smov [#allocation6]  }
  0x1b   :  { %s23_s23 = sshll.u32 %s735_s1, 4  ;;  %s46_s25 = sshll.u32 %s736_s24, 4  ;;  %s24_s23 = int_to_ptr.vmem [resolvable:$true] %s23_s23  ;;  %s47_s25 = int_to_ptr.vmem [resolvable:$true] %s46_s25 }
  0x1c   :  { %s671_s26 = scalar_lea.vmem %s24_s23, 32  ;;  %p676_p11 = scmp.lt.s32.totalorder %s24_s23, %s24_s23 }
  0x1d   :  { %p672_p10 = scmp.ne.s32.totalorder %s24_s23, %s671_s26  ;;  %p677_p12 = scmp.lt.s32.totalorder %s671_s26, %s671_s26 }
  0x1f   :  { %p678_p13 = por %p677_p12, %p676_p11 }
  0x21   :  { %p679_p0 = pnand %p678_p13, %p672_p10 }
  0x23   :  { %682 = shalt.err (!%p679_p0)
}
  0x24   :  { %26 = dma.hbm_to_vmem [thread:$0]  %s836_s0, 32, %s24_s23, [#allocation3]  }
  0x25   :  { %s691_s29 = scalar_lea.vmem %s47_s25, 512  ;;  %p696_p2 = scmp.lt.s32.totalorder %s47_s25, %s47_s25 }
  0x26   :  { %p692_p1 = scmp.ne.s32.totalorder %s47_s25, %s691_s29  ;;  %p697_p3 = scmp.lt.s32.totalorder %s691_s29, %s691_s29 }
  0x28   :  { %p698_p4 = por %p697_p3, %p696_p2 }
  0x2a   :  { %p699_p5 = pnand %p698_p4, %p692_p1 }
  0x2c   :  { %702 = shalt.err (!%p699_p5)
}
  0x2d   :  { %52 = dma.hbm_to_vmem [thread:$0]  %s839_s3, 512, %s47_s25, [#allocation5], %s730_s12, %s730_s12, %s731_s13  }
  0x2e   :  { %s737_s10 = smov [#allocation9]  }
  0x2f   :  { %s74_s11 = sshll.u32 %s737_s10, 4  ;;  %s75_s11 = int_to_ptr.vmem [resolvable:$true] %s74_s11 }
  0x30   :  { %s711_s14 = scalar_lea.vmem %s75_s11, 8192  ;;  %p716_p7 = scmp.lt.s32.totalorder %s75_s11, %s75_s11 }
  0x31   :  { %p712_p6 = scmp.ne.s32.totalorder %s75_s11, %s711_s14  ;;  %p717_p8 = scmp.lt.s32.totalorder %s711_s14, %s711_s14 }
  0x33   :  { %p718_p9 = por %p717_p8, %p716_p7 }
  0x35   :  { %p719_p10 = pnand %p718_p9, %p712_p6 }
  0x37   :  { %722 = shalt.err (!%p719_p10)
}
  0x38   :  { %80 = dma.hbm_to_vmem [thread:$0]  %s843_s7, 8192, %s75_s11, [#allocation8], %s733_s19, %s733_s19, %s734_s20  }
  0x39   :  { %723 = dma.done.wait [#allocation3], 32  }
  0x3a   :  { %724 = vsyncadd [#allocation3], 4294967264 }
  0x3b   :  { %725 = dma.done.wait [#allocation5], 1024  }
  0x3c   :  { %726 = vsyncadd [#allocation5], 4294966272 }
  0x3d   :  { %727 = dma.done.wait [#allocation8], 12288  }
  0x3e   :  { %728 = vsyncadd [#allocation8], 4294955008  ;;  %v738_v0 = vmov 0.0   ;;  %vm739_vm0 = vmmov 0   ;;  %v102_v1 = vld [vmem:[#allocation4 + $0x18] sm:$0xff]  ;;  %v101_v2 = vld [vmem:[#allocation4 + $0x10] sm:$0xff] }
  0x3f   :  { %582 = vmatprep.subr.mxu0 %v738_v0  ;;  %590 = vmatprep.mubr.msk.f32.mxu0 %vm739_vm0, %v738_v0  ;;  %v100_v3 = vld [vmem:[#allocation4 + $0x8] sm:$0xff]  ;;  %v99_v4 = vld [vmem:[#allocation4] sm:$0xff]  ;;  %v98_v5 = vld [vmem:[#allocation2] sm:$0x3]  ;;  %vm110_vm1 = vcmask 261120  }
  0x40   :  { %583 = vmatpush3.msra.mxu0 %v102_v1  ;;  %v188_v6 = vld [vmem:[#allocation6 + $0x18] sm:$0xff]  ;;  %v187_v7 = vld [vmem:[#allocation6 + $0x10] sm:$0xff]  ;;  %v186_v8 = vld [vmem:[#allocation6 + $0x8] sm:$0xff] }
  0x41   :  { %584 = vmatprep.subr.mxu0 %v738_v0  ;;  %v185_v9 = vld [vmem:[#allocation6] sm:$0xff]  ;;  %v301_v10 = vld [vmem:[#allocation7 + $0xf8] sm:$0xff]  ;;  %v300_v16 = vld [vmem:[#allocation7 + $0xf0] sm:$0xff] }
  0x42   :  { %585 = vmatpush3.msra.mxu0 %v101_v2  ;;  %v565_v11 = vld [vmem:[%s838_s2] ss:$0 sm:$0xff]  ;;  %v299_v17 = vld [vmem:[#allocation7 + $0xe8] sm:$0xff]  ;;  %v298_v18 = vld [vmem:[#allocation7 + $0xe0] sm:$0xff] }
  0x43   :  { %586 = vmatprep.subr.mxu0 %v738_v0  ;;  %v297_v19 = vld [vmem:[#allocation7 + $0xd8] sm:$0xff]  ;;  %v296_v20 = vld [vmem:[#allocation7 + $0xd0] sm:$0xff]  ;;  %v295_v21 = vld [vmem:[#allocation7 + $0xc8] sm:$0xff] }
  0x44   :  { %587 = vmatpush3.msra.mxu0 %v100_v3  ;;  %v294_v22 = vld [vmem:[#allocation7 + $0xc0] sm:$0xff]  ;;  %v293_v23 = vld [vmem:[#allocation7 + $0xb8] sm:$0xff]  ;;  %v292_v24 = vld [vmem:[#allocation7 + $0xb0] sm:$0xff] }
  0x45   :  { %588 = vmatprep.subr.mxu0 %v738_v0  ;;  %v291_v25 = vld [vmem:[#allocation7 + $0xa8] sm:$0xff]  ;;  %v290_v26 = vld [vmem:[#allocation7 + $0xa0] sm:$0xff]  ;;  %v289_v27 = vld [vmem:[#allocation7 + $0x98] sm:$0xff] }
  0x46   :  { %589 = vmatpush3.msra.mxu0 %v99_v4  ;;  %v288_v28 = vld [vmem:[#allocation7 + $0x90] sm:$0xff]  ;;  %v287_v29 = vld [vmem:[#allocation7 + $0x88] sm:$0xff]  ;;  %v286_v30 = vld [vmem:[#allocation7 + $0x80] sm:$0xff] }
  0x47   :  { %591 = vmatmul.mubr.msk.f32.vlgmr.msra.gmra.mxu0 %vm110_vm1, %v98_v5  ;;  %593 = vmatprep.subr.mxu0 %v738_v0  ;;  %v285_v31 = vld [vmem:[#allocation7 + $0x78] sm:$0xff]  ;;  %v284_v32 = vld [vmem:[#allocation7 + $0x70] sm:$0xff]  ;;  %v283_v33 = vld [vmem:[#allocation7 + $0x68] sm:$0xff] }
  0x48   :  { %594 = vmatpush3.msra.mxu0 %v188_v6  ;;  %601 = vmatprep.mubr.msk.f32.mxu0 %vm739_vm0, %v738_v0  ;;  %v282_v34 = vld [vmem:[#allocation7 + $0x60] sm:$0xff]  ;;  %v281_v35 = vld [vmem:[#allocation7 + $0x58] sm:$0xff]  ;;  %v280_v36 = vld [vmem:[#allocation7 + $0x50] sm:$0xff] }
  0x49   :  { %595 = vmatprep.subr.mxu0 %v738_v0  ;;  %v279_v37 = vld [vmem:[#allocation7 + $0x48] sm:$0xff]  ;;  %v278_v38 = vld [vmem:[#allocation7 + $0x40] sm:$0xff]  ;;  %v277_v39 = vld [vmem:[#allocation7 + $0x38] sm:$0xff] }
  0x4a   :  { %596 = vmatpush3.msra.mxu0 %v187_v7  ;;  %v276_v40 = vld [vmem:[#allocation7 + $0x30] sm:$0xff]  ;;  %v275_v41 = vld [vmem:[#allocation7 + $0x28] sm:$0xff]  ;;  %v274_v42 = vld [vmem:[#allocation7 + $0x20] sm:$0xff] }
  0x4b   :  { %597 = vmatprep.subr.mxu0 %v738_v0  ;;  %v273_v43 = vld [vmem:[#allocation7 + $0x18] sm:$0xff]  ;;  %v272_v44 = vld [vmem:[#allocation7 + $0x10] sm:$0xff]  ;;  %v271_v45 = vld [vmem:[#allocation7 + $0x8] sm:$0xff] }
  0x4c   :  { %598 = vmatpush3.msra.mxu0 %v186_v8  ;;  %v270_v46 = vld [vmem:[#allocation7] sm:$0xff]  ;;  %v418_v47 = vld [vmem:[#allocation9 + $0xf8] sm:$0xff]  ;;  %v417_v48 = vld [vmem:[#allocation9 + $0xf0] sm:$0xff] }
  0x4d   :  { %599 = vmatprep.subr.mxu0 %v738_v0  ;;  %v416_v49 = vld [vmem:[#allocation9 + $0xe8] sm:$0xff]  ;;  %463 = vmatprep.subr.mxu1 %v418_v47  ;;  %v415_v50 = vld [vmem:[#allocation9 + $0xe0] sm:$0xff]  ;;  %v414_v51 = vld [vmem:[#allocation9 + $0xd8] sm:$0xff] }
  0x4e   :  { %600 = vmatpush3.msra.mxu0 %v185_v9  ;;  %464 = vmatpush1.msra.mxu1 %v417_v48  ;;  %v413_v52 = vld [vmem:[#allocation9 + $0xd0] sm:$0xff]  ;;  %v412_v53 = vld [vmem:[#allocation9 + $0xc8] sm:$0xff]  ;;  %v411_v54 = vld [vmem:[#allocation9 + $0xc0] sm:$0xff] }
  0x4f   :  { %314 = vmatprep.subr.mxu0 %v301_v10  ;;  %465 = vmatprep.subr.mxu1 %v416_v49  ;;  %v410_v55 = vld [vmem:[#allocation9 + $0xb8] sm:$0xff]  ;;  %v409_v56 = vld [vmem:[#allocation9 + $0xb0] sm:$0xff]  ;;  %v408_v57 = vld [vmem:[#allocation9 + $0xa8] sm:$0xff] }
  0x50   :  { %466 = vmatpush1.msra.mxu1 %v415_v50  ;;  %v407_v58 = vld [vmem:[#allocation9 + $0xa0] sm:$0xff]  ;;  %v406_v59 = vld [vmem:[#allocation9 + $0x98] sm:$0xff]  ;;  %v405_v60 = vld [vmem:[#allocation9 + $0x90] sm:$0xff] }
  0x51   :  { %467 = vmatprep.subr.mxu1 %v414_v51  ;;  %v404_v61 = vld [vmem:[#allocation9 + $0x88] sm:$0xff]  ;;  %v403_v62 = vld [vmem:[#allocation9 + $0x80] sm:$0xff]  ;;  %v402_v63 = vld [vmem:[#allocation9 + $0x78] sm:$0xff] }
  0x52   :  { %468 = vmatpush1.msra.mxu1 %v413_v52  ;;  %v400_v1 = vld [vmem:[#allocation9 + $0x68] sm:$0xff]  ;;  %v399_v2 = vld [vmem:[#allocation9 + $0x60] sm:$0xff]  ;;  %v398_v3 = vld [vmem:[#allocation9 + $0x58] sm:$0xff]  ;;  %v304_v52 = vlaneseq }
  0x53   :  { %469 = vmatprep.subr.mxu1 %v412_v53  ;;  %v397_v4 = vld [vmem:[#allocation9 + $0x50] sm:$0xff]  ;;  %v396_v5 = vld [vmem:[#allocation9 + $0x48] sm:$0xff]  ;;  %v395_v6 = vld [vmem:[#allocation9 + $0x40] sm:$0xff] }
  0x54   :  { %470 = vmatpush1.msra.mxu1 %v411_v54  ;;  %v394_v7 = vld [vmem:[#allocation9 + $0x38] sm:$0xff]  ;;  %v393_v8 = vld [vmem:[#allocation9 + $0x30] sm:$0xff]  ;;  %v392_v9 = vld [vmem:[#allocation9 + $0x28] sm:$0xff]  ;;  %v305_v53 = vshrl.u32 %v304_v52, 7 }
  0x55   :  { %471 = vmatprep.subr.mxu1 %v410_v55  ;;  %v391_v10 = vld [vmem:[#allocation9 + $0x20] sm:$0xff]  ;;  %v422_v48 = vld [vmem:[#allocation9 + $0x118] sm:$0xff]  ;;  %v421_v49 = vld [vmem:[#allocation9 + $0x110] sm:$0xff] }
  0x56   :  { %472 = vmatpush1.msra.mxu1 %v409_v56  ;;  %v423_v47 = vld [vmem:[#allocation9 + $0x120] sm:$0xff]  ;;  %v420_v50 = vld [vmem:[#allocation9 + $0x108] sm:$0xff]  ;;  %v306_v54 = vsub.s32 0, %v305_v53  ;;  %v302_v55 = vld [vmem:[%s842_s6] sm:$0x3]  ;;  %v310_v56 = vsub.s32 1, %v305_v53 }
  0x57   :  { %473 = vmatprep.subr.mxu1 %v408_v57  ;;  %v419_v51 = vld [vmem:[#allocation9 + $0x100] sm:$0xff] }
  0x58   :  { %474 = vmatpush1.msra.mxu1 %v407_v58  ;;  %v307_v57 = vrot.slane %v302_v55, %v306_v54  ;;  %v311_v58 = vrot.slane %v302_v55, %v310_v56 }
  0x59   :  { %475 = vmatprep.subr.mxu1 %v406_v59 }
  0x5a   :  { %476 = vmatpush1.msra.mxu1 %v405_v60 }
  0x5b   :  { %477 = vmatprep.subr.mxu1 %v404_v61 }
  0x5c   :  { %478 = vmatpush1.msra.mxu1 %v403_v62 }
  0x5d   :  { %479 = vmatprep.subr.mxu1 %v402_v63 }
 0x107   :  { %v180_v12 = vpop.f32.mrf.mxu0 }
 0x108   :  { %v181_v13 = vadd.f32 %v565_v11, %v180_v12  ;;  %v390_v11 = vld [vmem:[#allocation9 + $0x18] sm:$0xff]  ;;  %v389_v12 = vld [vmem:[#allocation9 + $0x10] sm:$0xff] }
 0x109   :  { %v592_v14 = vpop.f32.mrf.mxu0 }
 0x10a   :  { %v184_v15 = vmax.f32 %v181_v13, 0.0  ;;  %v388_v13 = vld [vmem:[#allocation9 + $0x8] sm:$0xff]  ;;  %v387_v14 = vld [vmem:[#allocation9] sm:$0xff] }
 0x10c   :  { %602 = vmatmul.mubr.msk.f32.vlgmr.msra.gmra.mxu0 %vm110_vm1, %v184_v15  ;;  %v450_v15 = vld [vmem:[#allocation9 + $0x1f8] sm:$0xff] }
 0x10d   :  { %315 = vmatpush1.msra.mxu0 %v300_v16  ;;  %378 = vmatprep.mubr.f32.mxu0 %v738_v0  ;;  %v401_v0 = vld [vmem:[#allocation9 + $0x70] sm:$0xff] }
 0x10e   :  { %316 = vmatprep.subr.mxu0 %v299_v17  ;;  %480 = vmatpush1.msra.mxu1 %v401_v0  ;;  %v449_v16 = vld [vmem:[#allocation9 + $0x1f0] sm:$0xff]  ;;  %v448_v17 = vld [vmem:[#allocation9 + $0x1e8] sm:$0xff] }
 0x10f   :  { %317 = vmatpush1.msra.mxu0 %v298_v18  ;;  %481 = vmatprep.subr.mxu1 %v400_v1  ;;  %v447_v18 = vld [vmem:[#allocation9 + $0x1e0] sm:$0xff]  ;;  %v451_v1 = vld [vmem:[%s844_s8] sm:$0x3] }
 0x110   :  { %318 = vmatprep.subr.mxu0 %v297_v19  ;;  %482 = vmatpush1.msra.mxu1 %v399_v2  ;;  %v446_v19 = vld [vmem:[#allocation9 + $0x1d8] sm:$0xff]  ;;  %v456_v2 = vrot.slane %v451_v1, %v306_v54 }
 0x111   :  { %319 = vmatpush1.msra.mxu0 %v296_v20  ;;  %483 = vmatprep.subr.mxu1 %v398_v3  ;;  %v445_v20 = vld [vmem:[#allocation9 + $0x1d0] sm:$0xff]  ;;  %v460_v3 = vrot.slane %v451_v1, %v310_v56 }
 0x112   :  { %320 = vmatprep.subr.mxu0 %v295_v21  ;;  %484 = vmatpush1.msra.mxu1 %v397_v4  ;;  %v444_v21 = vld [vmem:[#allocation9 + $0x1c8] sm:$0xff] }
 0x113   :  { %321 = vmatpush1.msra.mxu0 %v294_v22  ;;  %485 = vmatprep.subr.mxu1 %v396_v5  ;;  %v443_v22 = vld [vmem:[#allocation9 + $0x1c0] sm:$0xff] }
 0x114   :  { %322 = vmatprep.subr.mxu0 %v293_v23  ;;  %486 = vmatpush1.msra.mxu1 %v395_v6  ;;  %v442_v23 = vld [vmem:[#allocation9 + $0x1b8] sm:$0xff] }
 0x115   :  { %323 = vmatpush1.msra.mxu0 %v292_v24  ;;  %487 = vmatprep.subr.mxu1 %v394_v7  ;;  %v441_v24 = vld [vmem:[#allocation9 + $0x1b0] sm:$0xff] }
 0x116   :  { %324 = vmatprep.subr.mxu0 %v291_v25  ;;  %488 = vmatpush1.msra.mxu1 %v393_v8  ;;  %v440_v25 = vld [vmem:[#allocation9 + $0x1a8] sm:$0xff] }
 0x117   :  { %325 = vmatpush1.msra.mxu0 %v290_v26  ;;  %489 = vmatprep.subr.mxu1 %v392_v9  ;;  %v439_v26 = vld [vmem:[#allocation9 + $0x1a0] sm:$0xff] }
 0x118   :  { %326 = vmatprep.subr.mxu0 %v289_v27  ;;  %490 = vmatpush1.msra.mxu1 %v391_v10  ;;  %v438_v27 = vld [vmem:[#allocation9 + $0x198] sm:$0xff] }
 0x119   :  { %327 = vmatpush1.msra.mxu0 %v288_v28  ;;  %491 = vmatprep.subr.mxu1 %v390_v11  ;;  %v437_v28 = vld [vmem:[#allocation9 + $0x190] sm:$0xff] }
 0x11a   :  { %328 = vmatprep.subr.mxu0 %v287_v29  ;;  %492 = vmatpush1.msra.mxu1 %v389_v12  ;;  %v436_v29 = vld [vmem:[#allocation9 + $0x188] sm:$0xff] }
 0x11b   :  { %329 = vmatpush1.msra.mxu0 %v286_v30  ;;  %493 = vmatprep.subr.mxu1 %v388_v13  ;;  %v435_v30 = vld [vmem:[#allocation9 + $0x180] sm:$0xff] }
 0x11c   :  { %330 = vmatprep.subr.mxu0 %v285_v31  ;;  %494 = vmatpush1.msra.mxu1 %v387_v14  ;;  %v434_v31 = vld [vmem:[#allocation9 + $0x178] sm:$0xff] }
 0x11d   :  { %331 = vmatpush1.msra.mxu0 %v284_v32  ;;  %495 = vmatprep.subr.mxu1 %v450_v15  ;;  %v433_v32 = vld [vmem:[#allocation9 + $0x170] sm:$0xff] }
 0x11e   :  { %332 = vmatprep.subr.mxu0 %v283_v33  ;;  %496 = vmatpush2.msra.mxu1 %v449_v16  ;;  %v432_v33 = vld [vmem:[#allocation9 + $0x168] sm:$0xff] }
 0x11f   :  { %333 = vmatpush1.msra.mxu0 %v282_v34  ;;  %497 = vmatprep.subr.mxu1 %v448_v17  ;;  %v431_v34 = vld [vmem:[#allocation9 + $0x160] sm:$0xff] }
 0x120   :  { %334 = vmatprep.subr.mxu0 %v281_v35  ;;  %498 = vmatpush2.msra.mxu1 %v447_v18  ;;  %v430_v35 = vld [vmem:[#allocation9 + $0x158] sm:$0xff] }
 0x121   :  { %335 = vmatpush1.msra.mxu0 %v280_v36  ;;  %499 = vmatprep.subr.mxu1 %v446_v19  ;;  %v429_v36 = vld [vmem:[#allocation9 + $0x150] sm:$0xff] }
 0x122   :  { %336 = vmatprep.subr.mxu0 %v279_v37  ;;  %500 = vmatpush2.msra.mxu1 %v445_v20  ;;  %v428_v37 = vld [vmem:[#allocation9 + $0x148] sm:$0xff] }
 0x123   :  { %337 = vmatpush1.msra.mxu0 %v278_v38  ;;  %501 = vmatprep.subr.mxu1 %v444_v21  ;;  %v427_v38 = vld [vmem:[#allocation9 + $0x140] sm:$0xff] }
 0x124   :  { %338 = vmatprep.subr.mxu0 %v277_v39  ;;  %502 = vmatpush2.msra.mxu1 %v443_v22  ;;  %v567_v39 = vld [vmem:[%s840_s4] ss:$0 sm:$0xff] }
 0x125   :  { %339 = vmatpush1.msra.mxu0 %v276_v40  ;;  %503 = vmatprep.subr.mxu1 %v442_v23 }
 0x126   :  { %340 = vmatprep.subr.mxu0 %v275_v41  ;;  %504 = vmatpush2.msra.mxu1 %v441_v24 }
 0x127   :  { %341 = vmatpush1.msra.mxu0 %v274_v42  ;;  %505 = vmatprep.subr.mxu1 %v440_v25 }
 0x128   :  { %342 = vmatprep.subr.mxu0 %v273_v43  ;;  %506 = vmatpush2.msra.mxu1 %v439_v26 }
 0x129   :  { %343 = vmatpush1.msra.mxu0 %v272_v44  ;;  %507 = vmatprep.subr.mxu1 %v438_v27  ;;  %v426_v44 = vld [vmem:[#allocation9 + $0x138] sm:$0xff] }
 0x12a   :  { %344 = vmatprep.subr.mxu0 %v271_v45  ;;  %508 = vmatpush2.msra.mxu1 %v437_v28  ;;  %v425_v45 = vld [vmem:[#allocation9 + $0x130] sm:$0xff] }
 0x12b   :  { %345 = vmatpush1.msra.mxu0 %v270_v46  ;;  %509 = vmatprep.subr.mxu1 %v436_v29  ;;  %v424_v46 = vld [vmem:[#allocation9 + $0x128] sm:$0xff] }
 0x12c   :  { %510 = vmatpush2.msra.mxu1 %v435_v30 }
 0x12d   :  { %511 = vmatprep.subr.mxu1 %v434_v31 }
 0x12e   :  { %512 = vmatpush2.msra.mxu1 %v433_v32 }
 0x12f   :  { %513 = vmatprep.subr.mxu1 %v432_v33 }
 0x130   :  { %514 = vmatpush2.msra.mxu1 %v431_v34 }
 0x131   :  { %515 = vmatprep.subr.mxu1 %v430_v35 }
 0x132   :  { %516 = vmatpush2.msra.mxu1 %v429_v36 }
 0x133   :  { %517 = vmatprep.subr.mxu1 %v428_v37 }
 0x134   :  { %518 = vmatpush2.msra.mxu1 %v427_v38 }
 0x135   :  { %519 = vmatprep.subr.mxu1 %v426_v44 }
 0x136   :  { %520 = vmatpush2.msra.mxu1 %v425_v45 }
 0x137   :  { %521 = vmatprep.subr.mxu1 %v424_v46 }
 0x138   :  { %522 = vmatpush2.msra.mxu1 %v423_v47 }
 0x139   :  { %523 = vmatprep.subr.mxu1 %v422_v48 }
 0x13a   :  { %524 = vmatpush2.msra.mxu1 %v421_v49 }
 0x13b   :  { %525 = vmatprep.subr.mxu1 %v420_v50 }
 0x13c   :  { %526 = vmatpush2.msra.mxu1 %v419_v51 }
 0x1cc   :  { %v265_v40 = vpop.f32.mrf.mxu0 }
 0x1cd   :  { %v266_v41 = vadd.f32 %v567_v39, %v265_v40 }
 0x1ce   :  { %v603_v42 = vpop.f32.mrf.mxu0 }
 0x1cf   :  { %v269_v43 = vmax.f32 %v266_v41, 0.0 }
 0x1d1   :  { %379 = vmatmul.mubr.f32.vlgmr.msra.gmra.mxu0 %v269_v43 }
 0x291   :  { %v380_v59 = vpop.f32.mrf.mxu0 }
 0x292   :  { %v381_v60 = vadd.f32 %v380_v59, %v307_v57 }
 0x293   :  { %v382_v61 = vpop.f32.mrf.mxu0 }
 0x294   :  { %v383_v62 = vadd.f32 %v382_v61, %v311_v58  ;;  %v385_v0 = vmax.f32 %v381_v60, 0.0 }
 0x296   :  { %v386_v63 = vmax.f32 %v383_v62, 0.0 }
 0x298   :  { %527 = vmatprep.mubr.f32.mxu1 %v386_v63 }
 0x299   :  { %528 = vmatmul.mubr.f32.vlgmr.msra.gmra.mxu1 %v385_v0 }
 0x359   :  { %v529_v4 = vpop.f32.mrf.mxu1 }
 0x35a   :  { %v530_v5 = vadd.f32 %v529_v4, %v456_v2 }
 0x35b   :  { %v531_v6 = vpop.f32.mrf.mxu1 }
 0x35c   :  { %v569_v7 = vmul.f32 -1.442695, %v530_v5  ;;  %v532_v8 = vadd.f32 %v531_v6, %v460_v3 }
 0x35e   :  { %615 = vpow2.f32 %v569_v7  ;;  %v570_v9 = vmul.f32 -1.442695, %v532_v8 }
 0x360   :  { %617 = vpow2.f32 %v570_v9 }
 0x36b   :  { %v616_v10 = vpop.eup %615 }
 0x36c   :  { %v540_v11 = vadd.f32 1.0, %v616_v10 }
 0x36d   :  { %v618_v12 = vpop.eup %617 }
 0x36e   :  { %v541_v13 = vadd.f32 1.0, %v618_v12  ;;  %619 = vrcp.f32 %v540_v11 }
 0x370   :  { %621 = vrcp.f32 %v541_v13 }
 0x37b   :  { %v620_v14 = vpop.eup %619 }
 0x37d   :  { %v622_v15 = vpop.eup %621 }
 0x37e   :  { %v548_v16 = vcombine.low %v620_v14, %v622_v15 }
 0x380   :  { %571 = vst.sshfl [vmem:[%s845_s9] sm:$0x33 pattern:$0x76325410] %v548_v16 }
 0x381   :  { %562 = vsyncpa [#allocation3], 1 }
 0x382   :  { %563 = vsyncpa [#allocation5], 1 }
 0x383   :  { %564 = vsyncpa [#allocation8], 1 }

</bundles_post_ra>
